<compile_context>
chip_gen: v6e
topology: v6e:2x2x1
jax: 0.10.0
libtpu: 0.0.40
codegen_flags: <defaults>
</compile_context>

<pallas_src>
import functools

import jax
import jax.numpy as jnp
from jax import lax
from jax.experimental import pallas as pl
from jax.experimental.pallas import tpu as pltpu


# ----------------------------------------------------------------------------
# Pallas kernel: two-hot embedding+projection, fused bi-directional LSTM
# recurrence (one MXU dot per step), fc — all resident in VMEM.
# ----------------------------------------------------------------------------
def _bilstm_fc_kernel(ids_f_ref,   # (S*B, 1) int32 forward  token ids (time-major)
                      ids_b_ref,   # (S*B, 1) int32 backward token ids, shifted by +V
                      tproj_ref,   # (2V, 8H) f32  emb@W_ih folded, block [fwd; bwd]
                      bg_ref,      # (1, 8H)  f32  fused gate biases (b_ih+b_hh), both dirs
                      whh_ref,     # (2H, 8H) f32  block-diag(Whh_f^T, Whh_b^T)
                      wfc_ref,     # (2H, Opad) f32 fc weight^T, zero-padded lanes
                      bfc_ref,     # (1, Opad)  f32 fc bias, zero-padded lanes
                      out_ref,     # (B, Opad)
                      *, seq_len, batch, hidden):
    S, B, H = seq_len, batch, hidden
    SB = S * B
    V2 = tproj_ref.shape[0]        # 2 * vocab

    # ---- fused embedding lookup + input projection: one "two-hot" matmul ----
    # Row t*B+b has a 1 at col ids_fwd (rows 0:V of tproj -> fwd gate columns)
    # and a 1 at col V+ids_bwd (rows V:2V -> bwd gate columns).  The zero
    # blocks of tproj make the two contributions land in disjoint columns.
    col = lax.broadcasted_iota(jnp.int32, (SB, V2), 1)
    twohot = (col == ids_f_ref[...]) | (col == ids_b_ref[...])
    xproj = jnp.dot(twohot.astype(jnp.float32), tproj_ref[...],
                    preferred_element_type=jnp.float32) + bg_ref[...]   # (SB, 8H)

    whh = whh_ref[...]                                                  # (2H, 8H)

    # Direction-interleaved gate column layout (each block H wide):
    #   [i_f, i_b, f_f, f_b, o_f, o_b, g_f, g_b]
    # so h = [h_f | h_b] and c = [c_f | c_b] stay lane-concatenated with no
    # per-step concat, and c at the end IS the module's cat(c_fwd, c_bwd).
    h = jnp.zeros((B, 2 * H), jnp.float32)
    c = jnp.zeros((B, 2 * H), jnp.float32)

    # Fully unrolled static time loop (S tiny & static).  Exactly ONE MXU dot
    # per step for BOTH directions (N = 8H = 256 fills the v6e/v7x MXU).
    for t in range(S):
        gates = (jnp.dot(h, whh, preferred_element_type=jnp.float32)
                 + xproj[t * B:(t + 1) * B, :])                         # (B, 8H)
        sg = jax.nn.sigmoid(gates[:, 0:6 * H])   # EUP only where needed (i,f,o)
        gg = jnp.tanh(gates[:, 6 * H:8 * H])     # tanh only on the g gate
        i_ = sg[:, 0:2 * H]
        f_ = sg[:, 2 * H:4 * H]
        o_ = sg[:, 4 * H:6 * H]
        c = f_ * c + i_ * gg
        h = o_ * jnp.tanh(c)

    # hidden = cat(c_n_fwd, c_n_bwd) == c ; single fc dot, lane-padded output.
    out = jnp.dot(c, wfc_ref[...], preferred_element_type=jnp.float32) + bfc_ref[...]
    out_ref[...] = out.astype(out_ref.dtype)


# ----------------------------------------------------------------------------
# Weights-time transform: fold the embedding into the input projection and
# build the direction-fused (block-diag / interleaved) kernel-layout tensors.
# ----------------------------------------------------------------------------
def prepare_kernel_params(params, *, o_pad=128):
    emb = params["emb"]                       # (V, E)
    H = params["whh_f"].shape[0]
    O = params["fc_b"].shape[-1]
    o_pad = max(o_pad, ((O + 127) // 128) * 128)

    def dir_interleave(mf, mb):
        # mf, mb: (..., 4H) in torch gate order [i, f, g, o].
        # -> (..., 8H) in kernel order [i_f,i_b,f_f,f_b,o_f,o_b,g_f,g_b].
        bf = [mf[..., k * H:(k + 1) * H] for k in (0, 1, 3, 2)]
        bb = [mb[..., k * H:(k + 1) * H] for k in (0, 1, 3, 2)]
        return jnp.concatenate([x for pair in zip(bf, bb) for x in pair], axis=-1)

    # Embedding folded into the per-direction input projections.
    t_f = emb @ params["wih_f"]               # (V, 4H)
    t_b = emb @ params["wih_b"]               # (V, 4H)
    tproj = jnp.concatenate(
        [dir_interleave(t_f, jnp.zeros_like(t_f)),       # rows 0:V  -> fwd cols
         dir_interleave(jnp.zeros_like(t_b), t_b)],      # rows V:2V -> bwd cols
        axis=0)                                          # (2V, 8H)

    whh = jnp.concatenate(
        [dir_interleave(params["whh_f"], jnp.zeros_like(params["whh_f"])),
         dir_interleave(jnp.zeros_like(params["whh_b"]), params["whh_b"])],
        axis=0)                                          # (2H, 8H) block-diag

    b_gates = dir_interleave(params["b_f"], params["b_b"])            # (1, 8H)

    wfc = jnp.zeros((2 * H, o_pad), jnp.float32).at[:, :O].set(params["fc_w"])
    bfc = jnp.zeros((1, o_pad), jnp.float32).at[:, :O].set(params["fc_b"])

    return {"tproj": tproj, "b_gates": b_gates, "whh": whh,
            "wfc": wfc, "bfc": bfc}


# ----------------------------------------------------------------------------
# Wrapper: one pallas_call, everything fused inside the kernel.
# ----------------------------------------------------------------------------
@functools.partial(jax.jit, static_argnames=("out_dim",))
def simple_lstm_forward(tokens, kp, *, out_dim):
    B, S = tokens.shape
    V = kp["tproj"].shape[0] // 2
    H = kp["whh"].shape[0] // 2
    O_pad = kp["wfc"].shape[1]
    SB = S * B

    # Time-major flat token ids (tiny int32 reshuffle only).  Backward ids are
    # time-reversed and pre-shifted by +V to address the bottom tproj block.
    # NOTE: ids are assumed in [0, V) — an out-of-range id yields a zero
    # embedding instead of torch's error.
    ids_f = jnp.transpose(tokens).reshape(SB, 1).astype(jnp.int32)
    ids_b = (jnp.transpose(tokens[:, ::-1]).reshape(SB, 1) + V).astype(jnp.int32)

    operands = (ids_f, ids_b, kp["tproj"], kp["b_gates"], kp["whh"],
                kp["wfc"], kp["bfc"])

    # Explicit scoped-VMEM budget sized from the real footprint (kernel is
    # whole-sequence resident; at realistic S this becomes a time-chunked,
    # double-buffered grid sized to 64 MiB on v7x / 128 MiB on v5e-v6e).
    footprint = sum(int(a.size) * a.dtype.itemsize for a in operands)
    footprint += B * O_pad * 4 + SB * 8 * H * 4        # output + xproj temp
    vmem_limit = int(max(4 << 20, 8 * footprint))

    flops = 2 * (SB * 2 * V * 8 * H          # two-hot embedding+projection matmul
                 + S * B * 2 * H * 8 * H     # fused recurrence ([h_f|h_b] @ blockdiag)
                 + B * 2 * H * O_pad)        # fc
    transcendentals = S * B * (6 * H + 2 * H + 2 * H)   # sigmoid + tanh(g) + tanh(c)
    bytes_accessed = 4 * (2 * SB + 2 * V * 8 * H + 8 * H
                          + 2 * H * 8 * H + 2 * H * O_pad + O_pad + B * O_pad)

    vmem = pl.BlockSpec(memory_space=pltpu.MemorySpace.VMEM)
    out_pad = pl.pallas_call(
        functools.partial(_bilstm_fc_kernel, seq_len=S, batch=B, hidden=H),
        out_shape=jax.ShapeDtypeStruct((B, O_pad), jnp.float32),
        in_specs=[vmem] * len(operands),
        out_specs=vmem,
        compiler_params=pltpu.CompilerParams(vmem_limit_bytes=vmem_limit),
        cost_estimate=pl.CostEstimate(flops=flops,
                                      transcendentals=transcendentals,
                                      bytes_accessed=bytes_accessed),
    )(*operands)
    return out_pad[:, :out_dim]


# ----------------------------------------------------------------------------
# Deterministic parameter construction (mirrors SimpleLSTM.__init__ shapes).
# ----------------------------------------------------------------------------
def make_params(key, vocab_size, emb_vocab_size, emb_dim, hidden_dim, output_dim):
    ks = jax.random.split(key, 6)
    H, E, O = hidden_dim, emb_dim, output_dim

    # Embedding table: given emb_mat part + extra rows for new vocab.
    emb_mat = jax.random.normal(ks[0], (emb_vocab_size, E), jnp.float32) * 0.5
    extra = jax.random.normal(ks[1], (vocab_size - emb_vocab_size, E), jnp.float32)
    emb = jnp.concatenate([emb_mat, extra], axis=0)          # (vocab, E)

    def lstm_dir(kw):
        k1, k2, k3, k4 = jax.random.split(kw, 4)
        s = 1.0 / jnp.sqrt(H)
        w_ih = jax.random.uniform(k1, (4 * H, E), jnp.float32, -s, s)
        w_hh = jax.random.uniform(k2, (4 * H, H), jnp.float32, -s, s)
        b_ih = jax.random.uniform(k3, (4 * H,), jnp.float32, -s, s)
        b_hh = jax.random.uniform(k4, (4 * H,), jnp.float32, -s, s)
        return w_ih, w_hh, b_ih, b_hh

    wih_f, whh_f, bih_f, bhh_f = lstm_dir(ks[2])
    wih_b, whh_b, bih_b, bhh_b = lstm_dir(ks[3])

    s = 1.0 / jnp.sqrt(2 * H)
    fc_w = jax.random.uniform(ks[4], (O, 2 * H), jnp.float32, -s, s)
    fc_b = jax.random.uniform(ks[5], (O,), jnp.float32, -s, s)

    return {
        "emb": emb,
        "wih_f": wih_f.T, "whh_f": whh_f.T, "b_f": (bih_f + bhh_f)[None, :],
        "wih_b": wih_b.T, "whh_b": whh_b.T, "b_b": (bih_b + bhh_b)[None, :],
        "fc_w": fc_w.T,                       # (2H, O)
        "fc_b": fc_b[None, :],                # (1, O)
    }


# ----------------------------------------------------------------------------
# Pure-JAX reference (same math, lax.scan) for a correctness check.
# ----------------------------------------------------------------------------
def reference_forward(tokens, params):
    emb = jnp.take(params["emb"], tokens, axis=0).astype(jnp.float32)  # (B,S,E)
    H = params["whh_f"].shape[0]

    def run_dir(x_bse, wih, whh, b):
        B = x_bse.shape[0]

        def step(carry, x_t):
            h, c = carry
            gates = x_t @ wih + h @ whh + b
            i = jax.nn.sigmoid(gates[:, 0 * H:1 * H])
            f = jax.nn.sigmoid(gates[:, 1 * H:2 * H])
            g = jnp.tanh(gates[:, 2 * H:3 * H])
            o = jax.nn.sigmoid(gates[:, 3 * H:4 * H])
            c = f * c + i * g
            h = o * jnp.tanh(c)
            return (h, c), None

        init = (jnp.zeros((B, H)), jnp.zeros((B, H)))
        (h, c), _ = lax.scan(step, init, jnp.transpose(x_bse, (1, 0, 2)))
        return c

    c_f = run_dir(emb, params["wih_f"], params["whh_f"], params["b_f"])
    c_b = run_dir(emb[:, ::-1, :], params["wih_b"], params["whh_b"], params["b_b"])
    hidden = jnp.concatenate([c_f, c_b], axis=1)
    return hidden @ params["fc_w"] + params["fc_b"]


if __name__ == "__main__":
    B, S = 2, 8
    vocab_size, emb_vocab_size = 50, 40
    emb_dim, hidden_dim, output_dim = 16, 32, 4

    key = jax.random.PRNGKey(0)
    k_tok, k_par = jax.random.split(key)

    tokens = jax.random.randint(k_tok, (B, S), 0, vocab_size, dtype=jnp.int32)
    params = make_params(k_par, vocab_size, emb_vocab_size,
                         emb_dim, hidden_dim, output_dim)
    kparams = prepare_kernel_params(params)   # weights-time kernel layout

    out = simple_lstm_forward(tokens, kparams, out_dim=output_dim)
    out = jax.block_until_ready(out)

    ref = reference_forward(tokens, params)
    assert out.shape == (B, output_dim)
    assert jnp.allclose(out, ref, rtol=1e-4, atol=1e-4), "mismatch vs reference"

    print("KERNEL_OK")
</pallas_src>

<mosaic_0001>
module attributes {stable_mosaic.version = 11 : i64} {
  func.func @_bilstm_fc_kernel(%arg0: memref<16x1xi32, #tpu.memory_space<vmem>>, %arg1: memref<16x1xi32, #tpu.memory_space<vmem>>, %arg2: memref<100x256xf32, #tpu.memory_space<vmem>>, %arg3: memref<1x256xf32, #tpu.memory_space<vmem>>, %arg4: memref<64x256xf32, #tpu.memory_space<vmem>>, %arg5: memref<64x128xf32, #tpu.memory_space<vmem>>, %arg6: memref<1x128xf32, #tpu.memory_space<vmem>>, %arg7: memref<2x128xf32, #tpu.memory_space<vmem>>) attributes {dimension_semantics = [], scalar_prefetch = 0 : i64, scratch_operands = 0 : i64, tpu.core_type = #tpu.core_type<tc>} {
    %0 = tpu.iota {dimensions = array<i32: 1>} : vector<16x100xi32>
    %c0 = arith.constant 0 : index
    %c0_0 = arith.constant 0 : index
    %1 = vector.load %arg0[%c0, %c0_0] : memref<16x1xi32, #tpu.memory_space<vmem>>, vector<16x1xi32>
    %2 = vector.broadcast %1 : vector<16x1xi32> to vector<16x100xi32>
    %3 = arith.cmpi eq, %0, %2 : vector<16x100xi32>
    %c0_1 = arith.constant 0 : index
    %c0_2 = arith.constant 0 : index
    %4 = vector.load %arg1[%c0_1, %c0_2] : memref<16x1xi32, #tpu.memory_space<vmem>>, vector<16x1xi32>
    %5 = vector.broadcast %4 : vector<16x1xi32> to vector<16x100xi32>
    %6 = arith.cmpi eq, %0, %5 : vector<16x100xi32>
    %7 = arith.ori %3, %6 : vector<16x100xi1>
    %8 = arith.extui %7 : vector<16x100xi1> to vector<16x100xi32>
    %9 = arith.sitofp %8 : vector<16x100xi32> to vector<16x100xf32>
    %c0_3 = arith.constant 0 : index
    %c0_4 = arith.constant 0 : index
    %10 = vector.load %arg2[%c0_3, %c0_4] : memref<100x256xf32, #tpu.memory_space<vmem>>, vector<100x256xf32>
    %cst = arith.constant dense<0.000000e+00> : vector<16x256xf32>
    %11 = tpu.matmul %9, %10, %cst {dimension_numbers = #tpu.dot_dimension_numbers<[1], [0], [0], [1], [0, 0, 1, 1], [], []>} : vector<16x100xf32>, vector<100x256xf32>, vector<16x256xf32> -> vector<16x256xf32>
    %c0_5 = arith.constant 0 : index
    %c0_6 = arith.constant 0 : index
    %12 = vector.load %arg3[%c0_5, %c0_6] : memref<1x256xf32, #tpu.memory_space<vmem>>, vector<1x256xf32>
    %13 = vector.broadcast %12 : vector<1x256xf32> to vector<16x256xf32>
    %14 = arith.addf %11, %13 : vector<16x256xf32>
    %c0_7 = arith.constant 0 : index
    %c0_8 = arith.constant 0 : index
    %15 = vector.load %arg4[%c0_7, %c0_8] : memref<64x256xf32, #tpu.memory_space<vmem>>, vector<64x256xf32>
    %cst_9 = arith.constant 0.000000e+00 : f32
    %16 = vector.broadcast %cst_9 : f32 to vector<2x64xf32>
    %cst_10 = arith.constant 0.000000e+00 : f32
    %17 = vector.broadcast %cst_10 : f32 to vector<2x64xf32>
    %cst_11 = arith.constant dense<0.000000e+00> : vector<2x256xf32>
    %18 = tpu.matmul %16, %15, %cst_11 {dimension_numbers = #tpu.dot_dimension_numbers<[1], [0], [0], [1], [0, 0, 1, 1], [], []>} : vector<2x64xf32>, vector<64x256xf32>, vector<2x256xf32> -> vector<2x256xf32>
    %19 = vector.extract_strided_slice %14 {offsets = [0, 0], sizes = [2, 256], strides = [1, 1]} : vector<16x256xf32> to vector<2x256xf32>
    %20 = arith.addf %18, %19 : vector<2x256xf32>
    %21 = vector.extract_strided_slice %20 {offsets = [0, 0], sizes = [2, 192], strides = [1, 1]} : vector<2x256xf32> to vector<2x192xf32>
    %22 = arith.negf %21 : vector<2x192xf32>
    %23 = math.exp %22 : vector<2x192xf32>
    %cst_12 = arith.constant 1.000000e+00 : f32
    %24 = vector.broadcast %cst_12 : f32 to vector<2x192xf32>
    %25 = arith.addf %24, %23 : vector<2x192xf32>
    %26 = arith.divf %24, %25 : vector<2x192xf32>
    %27 = vector.extract_strided_slice %20 {offsets = [0, 192], sizes = [2, 64], strides = [1, 1]} : vector<2x256xf32> to vector<2x64xf32>
    %28 = math.tanh %27 : vector<2x64xf32>
    %29 = vector.extract_strided_slice %26 {offsets = [0, 0], sizes = [2, 64], strides = [1, 1]} : vector<2x192xf32> to vector<2x64xf32>
    %30 = vector.extract_strided_slice %26 {offsets = [0, 64], sizes = [2, 64], strides = [1, 1]} : vector<2x192xf32> to vector<2x64xf32>
    %31 = vector.extract_strided_slice %26 {offsets = [0, 128], sizes = [2, 64], strides = [1, 1]} : vector<2x192xf32> to vector<2x64xf32>
    %32 = arith.mulf %30, %17 : vector<2x64xf32>
    %33 = arith.mulf %29, %28 : vector<2x64xf32>
    %34 = arith.addf %32, %33 : vector<2x64xf32>
    %35 = math.tanh %34 : vector<2x64xf32>
    %36 = arith.mulf %31, %35 : vector<2x64xf32>
    %cst_13 = arith.constant dense<0.000000e+00> : vector<2x256xf32>
    %37 = tpu.matmul %36, %15, %cst_13 {dimension_numbers = #tpu.dot_dimension_numbers<[1], [0], [0], [1], [0, 0, 1, 1], [], []>} : vector<2x64xf32>, vector<64x256xf32>, vector<2x256xf32> -> vector<2x256xf32>
    %38 = vector.extract_strided_slice %14 {offsets = [2, 0], sizes = [2, 256], strides = [1, 1]} : vector<16x256xf32> to vector<2x256xf32>
    %39 = arith.addf %37, %38 : vector<2x256xf32>
    %40 = vector.extract_strided_slice %39 {offsets = [0, 0], sizes = [2, 192], strides = [1, 1]} : vector<2x256xf32> to vector<2x192xf32>
    %41 = arith.negf %40 : vector<2x192xf32>
    %42 = math.exp %41 : vector<2x192xf32>
    %cst_14 = arith.constant 1.000000e+00 : f32
    %43 = vector.broadcast %cst_14 : f32 to vector<2x192xf32>
    %44 = arith.addf %43, %42 : vector<2x192xf32>
    %45 = arith.divf %43, %44 : vector<2x192xf32>
    %46 = vector.extract_strided_slice %39 {offsets = [0, 192], sizes = [2, 64], strides = [1, 1]} : vector<2x256xf32> to vector<2x64xf32>
    %47 = math.tanh %46 : vector<2x64xf32>
    %48 = vector.extract_strided_slice %45 {offsets = [0, 0], sizes = [2, 64], strides = [1, 1]} : vector<2x192xf32> to vector<2x64xf32>
    %49 = vector.extract_strided_slice %45 {offsets = [0, 64], sizes = [2, 64], strides = [1, 1]} : vector<2x192xf32> to vector<2x64xf32>
    %50 = vector.extract_strided_slice %45 {offsets = [0, 128], sizes = [2, 64], strides = [1, 1]} : vector<2x192xf32> to vector<2x64xf32>
    %51 = arith.mulf %49, %34 : vector<2x64xf32>
    %52 = arith.mulf %48, %47 : vector<2x64xf32>
    %53 = arith.addf %51, %52 : vector<2x64xf32>
    %54 = math.tanh %53 : vector<2x64xf32>
    %55 = arith.mulf %50, %54 : vector<2x64xf32>
    %cst_15 = arith.constant dense<0.000000e+00> : vector<2x256xf32>
    %56 = tpu.matmul %55, %15, %cst_15 {dimension_numbers = #tpu.dot_dimension_numbers<[1], [0], [0], [1], [0, 0, 1, 1], [], []>} : vector<2x64xf32>, vector<64x256xf32>, vector<2x256xf32> -> vector<2x256xf32>
    %57 = vector.extract_strided_slice %14 {offsets = [4, 0], sizes = [2, 256], strides = [1, 1]} : vector<16x256xf32> to vector<2x256xf32>
    %58 = arith.addf %56, %57 : vector<2x256xf32>
    %59 = vector.extract_strided_slice %58 {offsets = [0, 0], sizes = [2, 192], strides = [1, 1]} : vector<2x256xf32> to vector<2x192xf32>
    %60 = arith.negf %59 : vector<2x192xf32>
    %61 = math.exp %60 : vector<2x192xf32>
    %cst_16 = arith.constant 1.000000e+00 : f32
    %62 = vector.broadcast %cst_16 : f32 to vector<2x192xf32>
    %63 = arith.addf %62, %61 : vector<2x192xf32>
    %64 = arith.divf %62, %63 : vector<2x192xf32>
    %65 = vector.extract_strided_slice %58 {offsets = [0, 192], sizes = [2, 64], strides = [1, 1]} : vector<2x256xf32> to vector<2x64xf32>
    %66 = math.tanh %65 : vector<2x64xf32>
    %67 = vector.extract_strided_slice %64 {offsets = [0, 0], sizes = [2, 64], strides = [1, 1]} : vector<2x192xf32> to vector<2x64xf32>
    %68 = vector.extract_strided_slice %64 {offsets = [0, 64], sizes = [2, 64], strides = [1, 1]} : vector<2x192xf32> to vector<2x64xf32>
    %69 = vector.extract_strided_slice %64 {offsets = [0, 128], sizes = [2, 64], strides = [1, 1]} : vector<2x192xf32> to vector<2x64xf32>
    %70 = arith.mulf %68, %53 : vector<2x64xf32>
    %71 = arith.mulf %67, %66 : vector<2x64xf32>
    %72 = arith.addf %70, %71 : vector<2x64xf32>
    %73 = math.tanh %72 : vector<2x64xf32>
    %74 = arith.mulf %69, %73 : vector<2x64xf32>
    %cst_17 = arith.constant dense<0.000000e+00> : vector<2x256xf32>
    %75 = tpu.matmul %74, %15, %cst_17 {dimension_numbers = #tpu.dot_dimension_numbers<[1], [0], [0], [1], [0, 0, 1, 1], [], []>} : vector<2x64xf32>, vector<64x256xf32>, vector<2x256xf32> -> vector<2x256xf32>
    %76 = vector.extract_strided_slice %14 {offsets = [6, 0], sizes = [2, 256], strides = [1, 1]} : vector<16x256xf32> to vector<2x256xf32>
    %77 = arith.addf %75, %76 : vector<2x256xf32>
    %78 = vector.extract_strided_slice %77 {offsets = [0, 0], sizes = [2, 192], strides = [1, 1]} : vector<2x256xf32> to vector<2x192xf32>
    %79 = arith.negf %78 : vector<2x192xf32>
    %80 = math.exp %79 : vector<2x192xf32>
    %cst_18 = arith.constant 1.000000e+00 : f32
    %81 = vector.broadcast %cst_18 : f32 to vector<2x192xf32>
    %82 = arith.addf %81, %80 : vector<2x192xf32>
    %83 = arith.divf %81, %82 : vector<2x192xf32>
    %84 = vector.extract_strided_slice %77 {offsets = [0, 192], sizes = [2, 64], strides = [1, 1]} : vector<2x256xf32> to vector<2x64xf32>
    %85 = math.tanh %84 : vector<2x64xf32>
    %86 = vector.extract_strided_slice %83 {offsets = [0, 0], sizes = [2, 64], strides = [1, 1]} : vector<2x192xf32> to vector<2x64xf32>
    %87 = vector.extract_strided_slice %83 {offsets = [0, 64], sizes = [2, 64], strides = [1, 1]} : vector<2x192xf32> to vector<2x64xf32>
    %88 = vector.extract_strided_slice %83 {offsets = [0, 128], sizes = [2, 64], strides = [1, 1]} : vector<2x192xf32> to vector<2x64xf32>
    %89 = arith.mulf %87, %72 : vector<2x64xf32>
    %90 = arith.mulf %86, %85 : vector<2x64xf32>
    %91 = arith.addf %89, %90 : vector<2x64xf32>
    %92 = math.tanh %91 : vector<2x64xf32>
    %93 = arith.mulf %88, %92 : vector<2x64xf32>
    %cst_19 = arith.constant dense<0.000000e+00> : vector<2x256xf32>
    %94 = tpu.matmul %93, %15, %cst_19 {dimension_numbers = #tpu.dot_dimension_numbers<[1], [0], [0], [1], [0, 0, 1, 1], [], []>} : vector<2x64xf32>, vector<64x256xf32>, vector<2x256xf32> -> vector<2x256xf32>
    %95 = vector.extract_strided_slice %14 {offsets = [8, 0], sizes = [2, 256], strides = [1, 1]} : vector<16x256xf32> to vector<2x256xf32>
    %96 = arith.addf %94, %95 : vector<2x256xf32>
    %97 = vector.extract_strided_slice %96 {offsets = [0, 0], sizes = [2, 192], strides = [1, 1]} : vector<2x256xf32> to vector<2x192xf32>
    %98 = arith.negf %97 : vector<2x192xf32>
    %99 = math.exp %98 : vector<2x192xf32>
    %cst_20 = arith.constant 1.000000e+00 : f32
    %100 = vector.broadcast %cst_20 : f32 to vector<2x192xf32>
    %101 = arith.addf %100, %99 : vector<2x192xf32>
    %102 = arith.divf %100, %101 : vector<2x192xf32>
    %103 = vector.extract_strided_slice %96 {offsets = [0, 192], sizes = [2, 64], strides = [1, 1]} : vector<2x256xf32> to vector<2x64xf32>
    %104 = math.tanh %103 : vector<2x64xf32>
    %105 = vector.extract_strided_slice %102 {offsets = [0, 0], sizes = [2, 64], strides = [1, 1]} : vector<2x192xf32> to vector<2x64xf32>
    %106 = vector.extract_strided_slice %102 {offsets = [0, 64], sizes = [2, 64], strides = [1, 1]} : vector<2x192xf32> to vector<2x64xf32>
    %107 = vector.extract_strided_slice %102 {offsets = [0, 128], sizes = [2, 64], strides = [1, 1]} : vector<2x192xf32> to vector<2x64xf32>
    %108 = arith.mulf %106, %91 : vector<2x64xf32>
    %109 = arith.mulf %105, %104 : vector<2x64xf32>
    %110 = arith.addf %108, %109 : vector<2x64xf32>
    %111 = math.tanh %110 : vector<2x64xf32>
    %112 = arith.mulf %107, %111 : vector<2x64xf32>
    %cst_21 = arith.constant dense<0.000000e+00> : vector<2x256xf32>
    %113 = tpu.matmul %112, %15, %cst_21 {dimension_numbers = #tpu.dot_dimension_numbers<[1], [0], [0], [1], [0, 0, 1, 1], [], []>} : vector<2x64xf32>, vector<64x256xf32>, vector<2x256xf32> -> vector<2x256xf32>
    %114 = vector.extract_strided_slice %14 {offsets = [10, 0], sizes = [2, 256], strides = [1, 1]} : vector<16x256xf32> to vector<2x256xf32>
    %115 = arith.addf %113, %114 : vector<2x256xf32>
    %116 = vector.extract_strided_slice %115 {offsets = [0, 0], sizes = [2, 192], strides = [1, 1]} : vector<2x256xf32> to vector<2x192xf32>
    %117 = arith.negf %116 : vector<2x192xf32>
    %118 = math.exp %117 : vector<2x192xf32>
    %cst_22 = arith.constant 1.000000e+00 : f32
    %119 = vector.broadcast %cst_22 : f32 to vector<2x192xf32>
    %120 = arith.addf %119, %118 : vector<2x192xf32>
    %121 = arith.divf %119, %120 : vector<2x192xf32>
    %122 = vector.extract_strided_slice %115 {offsets = [0, 192], sizes = [2, 64], strides = [1, 1]} : vector<2x256xf32> to vector<2x64xf32>
    %123 = math.tanh %122 : vector<2x64xf32>
    %124 = vector.extract_strided_slice %121 {offsets = [0, 0], sizes = [2, 64], strides = [1, 1]} : vector<2x192xf32> to vector<2x64xf32>
    %125 = vector.extract_strided_slice %121 {offsets = [0, 64], sizes = [2, 64], strides = [1, 1]} : vector<2x192xf32> to vector<2x64xf32>
    %126 = vector.extract_strided_slice %121 {offsets = [0, 128], sizes = [2, 64], strides = [1, 1]} : vector<2x192xf32> to vector<2x64xf32>
    %127 = arith.mulf %125, %110 : vector<2x64xf32>
    %128 = arith.mulf %124, %123 : vector<2x64xf32>
    %129 = arith.addf %127, %128 : vector<2x64xf32>
    %130 = math.tanh %129 : vector<2x64xf32>
    %131 = arith.mulf %126, %130 : vector<2x64xf32>
    %cst_23 = arith.constant dense<0.000000e+00> : vector<2x256xf32>
    %132 = tpu.matmul %131, %15, %cst_23 {dimension_numbers = #tpu.dot_dimension_numbers<[1], [0], [0], [1], [0, 0, 1, 1], [], []>} : vector<2x64xf32>, vector<64x256xf32>, vector<2x256xf32> -> vector<2x256xf32>
    %133 = vector.extract_strided_slice %14 {offsets = [12, 0], sizes = [2, 256], strides = [1, 1]} : vector<16x256xf32> to vector<2x256xf32>
    %134 = arith.addf %132, %133 : vector<2x256xf32>
    %135 = vector.extract_strided_slice %134 {offsets = [0, 0], sizes = [2, 192], strides = [1, 1]} : vector<2x256xf32> to vector<2x192xf32>
    %136 = arith.negf %135 : vector<2x192xf32>
    %137 = math.exp %136 : vector<2x192xf32>
    %cst_24 = arith.constant 1.000000e+00 : f32
    %138 = vector.broadcast %cst_24 : f32 to vector<2x192xf32>
    %139 = arith.addf %138, %137 : vector<2x192xf32>
    %140 = arith.divf %138, %139 : vector<2x192xf32>
    %141 = vector.extract_strided_slice %134 {offsets = [0, 192], sizes = [2, 64], strides = [1, 1]} : vector<2x256xf32> to vector<2x64xf32>
    %142 = math.tanh %141 : vector<2x64xf32>
    %143 = vector.extract_strided_slice %140 {offsets = [0, 0], sizes = [2, 64], strides = [1, 1]} : vector<2x192xf32> to vector<2x64xf32>
    %144 = vector.extract_strided_slice %140 {offsets = [0, 64], sizes = [2, 64], strides = [1, 1]} : vector<2x192xf32> to vector<2x64xf32>
    %145 = vector.extract_strided_slice %140 {offsets = [0, 128], sizes = [2, 64], strides = [1, 1]} : vector<2x192xf32> to vector<2x64xf32>
    %146 = arith.mulf %144, %129 : vector<2x64xf32>
    %147 = arith.mulf %143, %142 : vector<2x64xf32>
    %148 = arith.addf %146, %147 : vector<2x64xf32>
    %149 = math.tanh %148 : vector<2x64xf32>
    %150 = arith.mulf %145, %149 : vector<2x64xf32>
    %cst_25 = arith.constant dense<0.000000e+00> : vector<2x256xf32>
    %151 = tpu.matmul %150, %15, %cst_25 {dimension_numbers = #tpu.dot_dimension_numbers<[1], [0], [0], [1], [0, 0, 1, 1], [], []>} : vector<2x64xf32>, vector<64x256xf32>, vector<2x256xf32> -> vector<2x256xf32>
    %152 = vector.extract_strided_slice %14 {offsets = [14, 0], sizes = [2, 256], strides = [1, 1]} : vector<16x256xf32> to vector<2x256xf32>
    %153 = arith.addf %151, %152 : vector<2x256xf32>
    %154 = vector.extract_strided_slice %153 {offsets = [0, 0], sizes = [2, 192], strides = [1, 1]} : vector<2x256xf32> to vector<2x192xf32>
    %155 = arith.negf %154 : vector<2x192xf32>
    %156 = math.exp %155 : vector<2x192xf32>
    %cst_26 = arith.constant 1.000000e+00 : f32
    %157 = vector.broadcast %cst_26 : f32 to vector<2x192xf32>
    %158 = arith.addf %157, %156 : vector<2x192xf32>
    %159 = arith.divf %157, %158 : vector<2x192xf32>
    %160 = vector.extract_strided_slice %153 {offsets = [0, 192], sizes = [2, 64], strides = [1, 1]} : vector<2x256xf32> to vector<2x64xf32>
    %161 = math.tanh %160 : vector<2x64xf32>
    %162 = vector.extract_strided_slice %159 {offsets = [0, 0], sizes = [2, 64], strides = [1, 1]} : vector<2x192xf32> to vector<2x64xf32>
    %163 = vector.extract_strided_slice %159 {offsets = [0, 64], sizes = [2, 64], strides = [1, 1]} : vector<2x192xf32> to vector<2x64xf32>
    %164 = arith.mulf %163, %148 : vector<2x64xf32>
    %165 = arith.mulf %162, %161 : vector<2x64xf32>
    %166 = arith.addf %164, %165 : vector<2x64xf32>
    %c0_27 = arith.constant 0 : index
    %c0_28 = arith.constant 0 : index
    %167 = vector.load %arg5[%c0_27, %c0_28] : memref<64x128xf32, #tpu.memory_space<vmem>>, vector<64x128xf32>
    %cst_29 = arith.constant dense<0.000000e+00> : vector<2x128xf32>
    %168 = tpu.matmul %166, %167, %cst_29 {dimension_numbers = #tpu.dot_dimension_numbers<[1], [0], [0], [1], [0, 0, 1, 1], [], []>} : vector<2x64xf32>, vector<64x128xf32>, vector<2x128xf32> -> vector<2x128xf32>
    %c0_30 = arith.constant 0 : index
    %c0_31 = arith.constant 0 : index
    %169 = vector.load %arg6[%c0_30, %c0_31] : memref<1x128xf32, #tpu.memory_space<vmem>>, vector<1x128xf32>
    %170 = vector.broadcast %169 : vector<1x128xf32> to vector<2x128xf32>
    %171 = arith.addf %168, %170 : vector<2x128xf32>
    %c0_32 = arith.constant 0 : index
    %c0_33 = arith.constant 0 : index
    %172 = vector.load %arg7[%c0_32, %c0_33] : memref<2x128xf32, #tpu.memory_space<vmem>>, vector<2x128xf32>
    tpu.vector_store %arg7[%c0_32, %c0_33], %171 {strides = array<i32>} : memref<2x128xf32, #tpu.memory_space<vmem>>, vector<2x128xf32>,
    return
  }
}

</mosaic_0001>

<bundles_post_ra>
// kernel: simple_lstm_forward.1
= control target key start
LH: loop header
LB: loop body
LE: loop exit
PB: predicated region body
PF: predicated region fallthrough
CT: control target
= control target key end

     0   :  { %12 = vsyncpa [#allocation3], 0  ;;  %s1769_s0 = inlined_call_operand.vmem [shape: s32[16,1], index: 0, kind: input, shape index: {}]   ;;  %s1770_s1 = inlined_call_operand.vmem [shape: s32[16,1], index: 1, kind: input, shape index: {}]   ;;  %s1771_s2 = inlined_call_operand.hbm [shape: f32[100,256], index: 2, kind: input, shape index: {}]   ;;  %s1772_s3 = inlined_call_operand.vmem [shape: f32[1,256], index: 3, kind: input, shape index: {}]   ;;  %s1773_s4 = inlined_call_operand.hbm [shape: f32[64,256], index: 4, kind: input, shape index: {}]   ;;  %s1774_s5 = inlined_call_operand.vmem [shape: f32[64,128], index: 5, kind: input, shape index: {}]   ;;  %s1775_s6 = inlined_call_operand.vmem [shape: f32[1,128], index: 6, kind: input, shape index: {}]   ;;  %s1776_s7 = inlined_call_operand.hbm [shape: f32[2,128], index: 7, kind: output, shape index: {}]  }
   0x1   :  { %13 = vsyncpa [#allocation6], 0 }
   0x2   :  { %14 = vsyncpa [#allocation4], 0  ;;  %s1409_s24 = smov [#allocation2]  }
   0x3   :  { %s24_s25 = sshll.u32 %s1409_s24, 4  ;;  %s25_s25 = int_to_ptr.vmem [resolvable:$true] %s24_s25 }
   0x4   :  { %s1351_s26 = scalar_lea.vmem %s25_s25, 3328  ;;  %p1356_p1 = scmp.lt.s32.totalorder %s25_s25, %s25_s25 }
   0x5   :  { %p1352_p0 = scmp.ne.s32.totalorder %s25_s25, %s1351_s26  ;;  %p1357_p2 = scmp.lt.s32.totalorder %s1351_s26, %s1351_s26 }
   0x7   :  { %p1358_p3 = por %p1357_p2, %p1356_p1 }
   0x9   :  { %p1359_p4 = pnand %p1358_p3, %p1352_p0 }
   0xb   :  { %1362 = shalt.err (!%p1359_p4)
}
   0xc   :  { %s1410_s27 = smov 256   ;;  %s1411_s28 = smov 16  }
   0xd   :  { %30 = dma.hbm_to_vmem [thread:$0]  %s1771_s2, 3328, %s25_s25, [#allocation3], %s1410_s27, %s1410_s27, %s1411_s28  }
   0xe   :  { %s1412_s8 = smov [#allocation5]  }
   0xf   :  { %s38_s9 = sshll.u32 %s1412_s8, 4  ;;  %s39_s9 = int_to_ptr.vmem [resolvable:$true] %s38_s9 }
  0x10   :  { %s1371_s10 = scalar_lea.vmem %s39_s9, 2048  ;;  %p1376_p6 = scmp.lt.s32.totalorder %s39_s9, %s39_s9 }
  0x11   :  { %p1372_p5 = scmp.ne.s32.totalorder %s39_s9, %s1371_s10  ;;  %p1377_p7 = scmp.lt.s32.totalorder %s1371_s10, %s1371_s10 }
  0x13   :  { %p1378_p8 = por %p1377_p7, %p1376_p6 }
  0x15   :  { %p1379_p9 = pnand %p1378_p8, %p1372_p5 }
  0x17   :  { %1382 = shalt.err (!%p1379_p9)
}
  0x18   :  { %44 = dma.hbm_to_vmem [thread:$0]  %s1773_s4, 2048, %s39_s9, [#allocation6], %s1410_s27, %s1410_s27, %s1411_s28  }
  0x19   :  { %1403 = dma.done.wait [#allocation3], 3328  }
  0x1a   :  { %1404 = vsyncadd [#allocation3], 4294963968 }
  0x1b   :  { %1405 = dma.done.wait [#allocation6], 2048  }
  0x1c   :  { %1406 = vsyncadd [#allocation6], 4294965248  ;;  %v1413_v0 = vmov 0   ;;  %vm128_vm0 = vcmask 1043456   ;;  %v1414_v1 = vmov 0.0   ;;  %v57_v2 = vld [vmem:[%s1769_s0] sm:$0xff]  ;;  %v55_v46 = vlaneseq }
  0x1d   :  { %1251 = vset.pattern.permute.xlu0 %v1413_v0  ;;  %1252 = vset.pattern.permute.xlu1 %v1413_v0  ;;  %v108_v3 = vld [vmem:[#allocation2 + $0xc8] sm:$0xf]  ;;  %v107_v4 = vld [vmem:[#allocation2 + $0xc0] sm:$0xf]  ;;  %v106_v5 = vld [vmem:[#allocation2 + $0xb8] sm:$0xff]  ;;  %vm121_vm3 = vcmask 818176  }
  0x1e   :  { %199 = vmatprep.mubr.f32.mxu0 %v1414_v1  ;;  %296 = vmatprep.mubr.f32.mxu1 %v1414_v1  ;;  %v105_v6 = vld [vmem:[#allocation2 + $0xb0] sm:$0xff]  ;;  %v67_v7 = vld [vmem:[%s1770_s1] sm:$0xff]  ;;  %v104_v8 = vld [vmem:[#allocation2 + $0xa8] sm:$0xff]  ;;  %v1540_v48 = vand.u32 127, %v55_v46  ;;  %v112_v51 = vshrl.u32 %v55_v46, 7  ;;  %s1415_s17 = smov 64  }
  0x1f   :  { %60 = vperm.xlu0 %1251, %v57_v2   ;;  %1186 = vmatprep.subr.msk.mxu0 %vm128_vm0, %v108_v3  ;;  %v103_v9 = vld [vmem:[#allocation2 + $0xa0] sm:$0xff]  ;;  %v102_v10 = vld [vmem:[#allocation2 + $0x98] sm:$0xff]  ;;  %v1472_v11 = vld [vmem:[#allocation5 + $0x78] sm:$0xff]  ;;  %vm228_vm5 = vcmask 523264   ;;  %vm1416_vm9 = vmmov 0   ;;  %s1417_s13 = smov [#allocation7]  }
  0x20   :  { %1187 = vmatpush1.msk.msra.mxu0 %vm128_vm0, %v107_v4  ;;  %v101_v12 = vld [vmem:[#allocation2 + $0x90] sm:$0xff]  ;;  %v1474_v13 = vld [vmem:[#allocation5 + $0x70] sm:$0xff]  ;;  %v1476_v14 = vld [vmem:[#allocation5 + $0x68] sm:$0xff]  ;;  %248 = vmatprep.subr.mxu1 %v1472_v11  ;;  %v117_v52 = vsub.s32 1, %v112_v51  ;;  %v113_v62 = vsub.s32 0, %v112_v51  ;;  %s1174_s4 = sshll.u32 %s1417_s13, 4  ;;  %s1175_s4 = int_to_ptr.vmem [resolvable:$true] %s1174_s4 }
  0x21   :  { %143 = vmatprep.subr.mxu0 %v106_v5  ;;  %v100_v15 = vld [vmem:[#allocation2 + $0x88] sm:$0xff]  ;;  %v1479_v16 = vld [vmem:[#allocation5 + $0x60] sm:$0xff]  ;;  %v99_v17 = vld [vmem:[#allocation2 + $0x80] sm:$0xff]  ;;  %249 = vmatpush1.msra.mxu1 %v1474_v13  ;;  %p1388_p11 = scmp.lt.s32.totalorder %s1175_s4, %s1175_s4 }
  0x22   :  { %144 = vmatpush1.msra.mxu0 %v105_v6  ;;  %v1482_v18 = vld [vmem:[#allocation5 + $0x58] sm:$0xff]  ;;  %v98_v19 = vld [vmem:[#allocation2 + $0x78] sm:$0xff]  ;;  %250 = vmatprep.subr.mxu1 %v1476_v14  ;;  %v1485_v20 = vld [vmem:[#allocation5 + $0x50] sm:$0xff] }
  0x23   :  { %70 = vperm.xlu0 %1251, %v67_v7   ;;  %145 = vmatprep.subr.mxu0 %v104_v8  ;;  %v97_v21 = vld [vmem:[#allocation2 + $0x70] sm:$0xff]  ;;  %v1488_v22 = vld [vmem:[#allocation5 + $0x48] sm:$0xff]  ;;  %v96_v23 = vld [vmem:[#allocation2 + $0x68] sm:$0xff] }
  0x24   :  { %146 = vmatpush1.msra.mxu0 %v103_v9  ;;  %251 = vmatpush1.msra.mxu1 %v1479_v16  ;;  %v1491_v24 = vld [vmem:[#allocation5 + $0x40] sm:$0xff]  ;;  %v95_v25 = vld [vmem:[#allocation2 + $0x60] sm:$0xff]  ;;  %v1494_v26 = vld [vmem:[#allocation5 + $0x38] sm:$0xff] }
  0x25   :  { %147 = vmatprep.subr.mxu0 %v102_v10  ;;  %252 = vmatprep.subr.mxu1 %v1482_v18  ;;  %v94_v27 = vld [vmem:[#allocation2 + $0x58] sm:$0xff]  ;;  %v1497_v28 = vld [vmem:[#allocation5 + $0x30] sm:$0xff]  ;;  %v93_v29 = vld [vmem:[#allocation2 + $0x50] sm:$0xff] }
  0x26   :  { %148 = vmatpush1.msra.mxu0 %v101_v12  ;;  %253 = vmatpush1.msra.mxu1 %v1485_v20  ;;  %v1500_v30 = vld [vmem:[#allocation5 + $0x28] sm:$0xff]  ;;  %v92_v31 = vld [vmem:[#allocation2 + $0x48] sm:$0xff]  ;;  %v1503_v32 = vld [vmem:[#allocation5 + $0x20] sm:$0xff] }
  0x27   :  { %149 = vmatprep.subr.mxu0 %v100_v15  ;;  %254 = vmatprep.subr.mxu1 %v1488_v22  ;;  %v91_v33 = vld [vmem:[#allocation2 + $0x40] sm:$0xff]  ;;  %v1506_v34 = vld [vmem:[#allocation5 + $0x18] sm:$0xff]  ;;  %v90_v35 = vld [vmem:[#allocation2 + $0x38] sm:$0xff] }
  0x28   :  { %150 = vmatpush1.msra.mxu0 %v99_v17  ;;  %255 = vmatpush1.msra.mxu1 %v1491_v24  ;;  %v1509_v36 = vld [vmem:[#allocation5 + $0x10] sm:$0xff]  ;;  %v89_v37 = vld [vmem:[#allocation2 + $0x30] sm:$0xff]  ;;  %v1512_v38 = vld [vmem:[#allocation5 + $0x8] sm:$0xff] }
  0x29   :  { %151 = vmatprep.subr.mxu0 %v98_v19  ;;  %256 = vmatprep.subr.mxu1 %v1494_v26  ;;  %v88_v39 = vld [vmem:[#allocation2 + $0x28] sm:$0xff]  ;;  %v1515_v40 = vld [vmem:[#allocation5] sm:$0xff]  ;;  %v87_v41 = vld [vmem:[#allocation2 + $0x20] sm:$0xff] }
  0x2a   :  { %152 = vmatpush1.msra.mxu0 %v97_v21  ;;  %257 = vmatpush1.msra.mxu1 %v1497_v28  ;;  %v86_v42 = vld [vmem:[#allocation2 + $0x18] sm:$0xff]  ;;  %v85_v43 = vld [vmem:[#allocation2 + $0x10] sm:$0xff]  ;;  %v84_v44 = vld [vmem:[#allocation2 + $0x8] sm:$0xff] }
  0x2b   :  { %153 = vmatprep.subr.mxu0 %v96_v23  ;;  %258 = vmatprep.subr.mxu1 %v1500_v30  ;;  %v83_v45 = vld [vmem:[#allocation2] sm:$0xff] }
  0x2c   :  { %154 = vmatpush1.msra.mxu0 %v95_v25  ;;  %259 = vmatpush1.msra.mxu1 %v1503_v32  ;;  %v109_v53 = vld [vmem:[%s1772_s3] sm:$0x3] }
  0x2d   :  { %155 = vmatprep.subr.mxu0 %v94_v27  ;;  %260 = vmatprep.subr.mxu1 %v1506_v34  ;;  %v1566_v54 = vrot.slane %v109_v53, %v117_v52  ;;  %v1573_v63 = vrot.slane %v109_v53, %v113_v62 }
  0x2e   :  { %156 = vmatpush1.msra.mxu0 %v93_v29  ;;  %261 = vmatpush1.msra.mxu1 %v1509_v36 }
  0x2f   :  { %157 = vmatprep.subr.mxu0 %v92_v31  ;;  %262 = vmatprep.subr.mxu1 %v1512_v38 }
  0x30   :  { %158 = vmatpush1.msra.mxu0 %v91_v33  ;;  %263 = vmatpush1.msra.mxu1 %v1515_v40 }
  0x31   :  { %159 = vmatprep.subr.mxu0 %v90_v35  ;;  %297 = vmatmul.mubr.f32.vlgmr.msra.gmra.mxu1 %v1414_v1 }
  0x32   :  { %160 = vmatpush1.msra.mxu0 %v89_v37  ;;  %358 = vmatprep.subr.mxu1 %v1472_v11 }
  0x33   :  { %161 = vmatprep.subr.mxu0 %v88_v39  ;;  %359 = vmatpush1.msra.mxu1 %v1474_v13 }
  0x34   :  { %162 = vmatpush1.msra.mxu0 %v87_v41  ;;  %360 = vmatprep.subr.mxu1 %v1476_v14 }
  0x35   :  { %163 = vmatprep.subr.mxu0 %v86_v42  ;;  %361 = vmatpush1.msra.mxu1 %v1479_v16  ;;  %v58_v42 = vld [vmem:[%s1769_s0 + $0x8] sm:$0xff] }
  0x36   :  { %164 = vmatpush1.msra.mxu0 %v85_v43  ;;  %362 = vmatprep.subr.mxu1 %v1482_v18 }
  0x37   :  { %165 = vmatprep.subr.mxu0 %v84_v44  ;;  %406 = vmatprep.mubr.f32.mxu1 %v1414_v1 }
  0x38   :  { %166 = vmatpush1.msra.mxu0 %v83_v45  ;;  %363 = vmatpush1.msra.mxu1 %v1485_v20 }
  0x39   :  { %466 = vmatprep.subr.mxu0 %v1472_v11  ;;  %364 = vmatprep.subr.mxu1 %v1488_v22 }
  0x3a   :  { %365 = vmatpush1.msra.mxu1 %v1491_v24 }
  0x3b   :  { %366 = vmatprep.subr.mxu1 %v1494_v26 }
  0x3c   :  { %367 = vmatpush1.msra.mxu1 %v1497_v28 }
  0x3d   :  { %368 = vmatprep.subr.mxu1 %v1500_v30 }
  0x3e   :  { %369 = vmatpush1.msra.mxu1 %v1503_v32 }
  0x3f   :  { %370 = vmatprep.subr.mxu1 %v1506_v34 }
  0x40   :  { %371 = vmatpush1.msra.mxu1 %v1509_v36 }
  0x41   :  { %372 = vmatprep.subr.mxu1 %v1512_v38 }
  0x42   :  { %373 = vmatpush1.msra.mxu1 %v1515_v40 }
  0x43   :  { %574 = vmatprep.subr.mxu1 %v1472_v11 }
  0x9a   :  { %v61_v47 = vpop.permute.xlu0 %60 }
  0x9b   :  { %vm65_vm1 = vcmp.eq.s32.totalorder %v1540_v48, %v61_v47 }
  0x9e   :  { %v71_v49 = vpop.permute.xlu0 %70 }
  0x9f   :  { %vm75_vm2 = vcmp.eq.s32.totalorder %v1540_v48, %v71_v49 }
  0xa0   :  { %vm77_vm4 = vmor %vm65_vm1, %vm75_vm2 }
  0xa1   :  { %v1184_v50 = vsel %vm77_vm4, 1.0, %v1414_v1 }
  0xa2   :  { %1188 = vmatmul.mubr.msk.f32.vlgmr.msra.gmra.mxu0 %vm121_vm3, %v1184_v50  ;;  %v68_v50 = vld [vmem:[%s1770_s1 + $0x8] sm:$0xff] }
  0xa3   :  { %205 = vmatprep.mubr.f32.mxu0 %v1414_v1  ;;  %467 = vmatpush1.msra.mxu0 %v1474_v13 }
  0xa4   :  { %468 = vmatprep.subr.mxu0 %v1476_v14 }
  0xa5   :  { %469 = vmatpush1.msra.mxu0 %v1479_v16 }
  0xa6   :  { %470 = vmatprep.subr.mxu0 %v1482_v18 }
  0xa7   :  { %471 = vmatpush1.msra.mxu0 %v1485_v20 }
  0xa8   :  { %472 = vmatprep.subr.mxu0 %v1488_v22 }
  0xa9   :  { %473 = vmatpush1.msra.mxu0 %v1491_v24 }
  0xaa   :  { %474 = vmatprep.subr.mxu0 %v1494_v26 }
  0xab   :  { %475 = vmatpush1.msra.mxu0 %v1497_v28 }
  0xac   :  { %476 = vmatprep.subr.mxu0 %v1500_v30 }
  0xad   :  { %477 = vmatpush1.msra.mxu0 %v1503_v32 }
  0xae   :  { %478 = vmatprep.subr.mxu0 %v1506_v34 }
  0xaf   :  { %479 = vmatpush1.msra.mxu0 %v1509_v36 }
  0xb0   :  { %480 = vmatprep.subr.mxu0 %v1512_v38 }
  0xb1   :  { %481 = vmatpush1.msra.mxu0 %v1515_v40 }
  0xb2   :  { %678 = vmatprep.subr.mxu0 %v1472_v11 }
  0xf1   :  { %v298_v56 = vpop.f32.mrf.mxu1 }
  0xf3   :  { %v300_v59 = vpop.f32.mrf.mxu1 }
 0x162   :  { %v201_v55 = vpop.f32.mrf.mxu0 }
 0x163   :  { %v1576_v0 = vadd.f32 %v201_v55, %v1573_v63 }
 0x164   :  { %v203_v57 = vpop.f32.mrf.mxu0 }
 0x165   :  { %v1569_v58 = vadd.f32 %v203_v57, %v1566_v54  ;;  %v299_v2 = vadd.f32 %v298_v56, %v1576_v0  ;;  %v335_v29 = vrot.slane %v1576_v0, 2 }
 0x167   :  { %v301_v60 = vadd.f32 %v300_v59, %v1569_v58  ;;  %v1190_v3 = vmul.f32 -1.442695, %v299_v2  ;;  %v336_v35 = vrot.slane %v1569_v58, 2 }
 0x169   :  { %1253 = vtanh.f32 %v301_v60  ;;  %v1191_v17 = vmul.f32 -1.442695, %v301_v60 }
 0x16a   :  { %1255 = vpow2.f32 %v1190_v3 }
 0x176   :  { %v1254_v61 = vpop.eup %1253 }
 0x177   :  { %318 = vrot.lane.b32.xlu1 %v1254_v61, %s1415_s17  ;;  %v1256_v4 = vpop.eup %1255 }
 0x178   :  { %v309_v5 = vadd.f32 1.0, %v1256_v4 }
 0x17a   :  { %1257 = vrcp.f32 %v309_v5 }
 0x187   :  { %v1258_v6 = vpop.eup %1257 }
 0x188   :  { %v316_v9 = vmul.f32 0.0, %v1258_v6 }
 0x1e9   :  { %v319_v7 = vpop.permute.xlu1 %318 }
 0x1ea   :  { %v321_v8 = vmul.f32 %v1258_v6, %v319_v7  ;;  %v443_v6 = vrot.slane %v1576_v0, 4 }
 0x1ec   :  { %323 = vrot.lane.b32.xlu1 %v321_v8, %s1415_s17 }
 0x25e   :  { %v324_v10 = vpop.permute.xlu1 %323 }
 0x25f   :  { %v326_v12 = vadd.f32 %v324_v10, %v316_v9  ;;  %v444_v9 = vrot.slane %v1569_v58, 4 }
 0x261   :  { %1259 = vtanh.f32 %v326_v12 }
 0x262   :  { %1261 = vpow2.f32 %v1191_v17 }
 0x26e   :  { %v1260_v15 = vpop.eup %1259 }
 0x26f   :  { %329 = vrot.lane.b32.xlu0 %v1260_v15, %s1415_s17  ;;  %v1262_v19 = vpop.eup %1261 }
 0x270   :  { %v310_v21 = vadd.f32 1.0, %v1262_v19 }
 0x272   :  { %1263 = vrcp.f32 %v310_v21 }
 0x27f   :  { %v1264_v23 = vpop.eup %1263 }
 0x2e1   :  { %v330_v25 = vpop.permute.xlu0 %329 }
 0x2e2   :  { %v332_v27 = vmul.f32 %v1264_v23, %v330_v25 }
 0x2e4   :  { %1192 = vmatmul.mubr.msk.f32.vlgmr.msra.gmra.mxu1 %vm228_vm5, %v332_v27 }
 0x2e5   :  { %575 = vmatpush1.msra.mxu1 %v1474_v13  ;;  %622 = vmatprep.mubr.f32.mxu1 %v1414_v1 }
 0x2e6   :  { %576 = vmatprep.subr.mxu1 %v1476_v14 }
 0x2e7   :  { %577 = vmatpush1.msra.mxu1 %v1479_v16 }
 0x2e8   :  { %578 = vmatprep.subr.mxu1 %v1482_v18 }
 0x2e9   :  { %579 = vmatpush1.msra.mxu1 %v1485_v20 }
 0x2ea   :  { %580 = vmatprep.subr.mxu1 %v1488_v22 }
 0x2eb   :  { %581 = vmatpush1.msra.mxu1 %v1491_v24 }
 0x2ec   :  { %582 = vmatprep.subr.mxu1 %v1494_v26 }
 0x2ed   :  { %583 = vmatpush1.msra.mxu1 %v1497_v28 }
 0x2ee   :  { %584 = vmatprep.subr.mxu1 %v1500_v30 }
 0x2ef   :  { %585 = vmatpush1.msra.mxu1 %v1503_v32 }
 0x2f0   :  { %586 = vmatprep.subr.mxu1 %v1506_v34 }
 0x2f1   :  { %587 = vmatpush1.msra.mxu1 %v1509_v36 }
 0x2f2   :  { %588 = vmatprep.subr.mxu1 %v1512_v38 }
 0x2f3   :  { %589 = vmatpush1.msra.mxu1 %v1515_v40 }
 0x2f4   :  { %788 = vmatprep.subr.mxu1 %v1472_v11 }
 0x3a4   :  { %v408_v31 = vpop.f32.mrf.mxu1 }
 0x3a5   :  { %v409_v33 = vadd.f32 %v408_v31, %v335_v29 }
 0x3a6   :  { %v410_v37 = vpop.f32.mrf.mxu1 }
 0x3a7   :  { %v411_v39 = vadd.f32 %v410_v37, %v336_v35  ;;  %v1193_v43 = vmul.f32 -1.442695, %v409_v33 }
 0x3a9   :  { %1265 = vtanh.f32 %v411_v39  ;;  %v1194_v60 = vmul.f32 -1.442695, %v411_v39 }
 0x3aa   :  { %1267 = vpow2.f32 %v1193_v43 }
 0x3b6   :  { %v1266_v41 = vpop.eup %1265 }
 0x3b7   :  { %428 = vrot.lane.b32.xlu1 %v1266_v41, %s1415_s17  ;;  %v1268_v44 = vpop.eup %1267 }
 0x3b8   :  { %v419_v45 = vadd.f32 1.0, %v1268_v44 }
 0x3ba   :  { %1269 = vrcp.f32 %v419_v45  ;;  %v551_v45 = vrot.slane %v1576_v0, 6 }
 0x3bb   :  { %63 = vperm.xlu1 %1252, %v58_v42  }
 0x3c7   :  { %v1270_v46 = vpop.eup %1269 }
 0x3c8   :  { %v426_v51 = vmul.f32 %v1270_v46, %v326_v12 }
 0x429   :  { %v429_v47 = vpop.permute.xlu1 %428 }
 0x42a   :  { %v431_v49 = vmul.f32 %v1270_v46, %v429_v47 }
 0x42c   :  { %433 = vrot.lane.b32.xlu0 %v431_v49, %s1415_s17  ;;  %v552_v49 = vrot.slane %v1569_v58, 6 }
 0x430   :  { %73 = vperm.xlu0 %1251, %v68_v50  }
 0x436   :  { %v64_v55 = vpop.permute.xlu1 %63 }
 0x437   :  { %vm66_vm6 = vcmp.eq.s32.totalorder %v1540_v48, %v64_v55 }
 0x49e   :  { %v434_v52 = vpop.permute.xlu0 %433 }
 0x49f   :  { %v436_v53 = vadd.f32 %v434_v52, %v426_v51 }
 0x4a1   :  { %1271 = vtanh.f32 %v436_v53 }
 0x4a2   :  { %1273 = vpow2.f32 %v1194_v60 }
 0x4ab   :  { %v74_v56 = vpop.permute.xlu0 %73 }
 0x4ac   :  { %vm76_vm7 = vcmp.eq.s32.totalorder %v1540_v48, %v74_v56 }
 0x4ad   :  { %vm78_vm8 = vmor %vm66_vm6, %vm76_vm7 }
 0x4ae   :  { %v1272_v57 = vpop.eup %1271  ;;  %v1185_v59 = vsel %vm78_vm8, 1.0, %v1414_v1 }
 0x4af   :  { %1189 = vmatmul.mubr.msk.f32.gmra.mxu0 %vm121_vm3, %v1185_v59  ;;  %439 = vrot.lane.b32.xlu1 %v1272_v57, %s1415_s17  ;;  %v1274_v61 = vpop.eup %1273 }
 0x4b0   :  { %514 = vmatprep.mubr.f32.mxu0 %v1414_v1  ;;  %v420_v62 = vadd.f32 1.0, %v1274_v61 }
 0x4b2   :  { %1275 = vrcp.f32 %v420_v62 }
 0x4bf   :  { %v1276_v2 = vpop.eup %1275 }
 0x521   :  { %v440_v3 = vpop.permute.xlu1 %439 }
 0x522   :  { %v442_v4 = vmul.f32 %v1276_v2, %v440_v3 }
 0x524   :  { %1195 = vmatmul.mubr.msk.f32.vlgmr.msra.gmra.mxu0 %vm228_vm5, %v442_v4 }
 0x525   :  { %679 = vmatpush1.msra.mxu0 %v1474_v13  ;;  %726 = vmatprep.mubr.f32.mxu0 %v1414_v1 }
 0x526   :  { %680 = vmatprep.subr.mxu0 %v1476_v14 }
 0x527   :  { %681 = vmatpush1.msra.mxu0 %v1479_v16 }
 0x528   :  { %682 = vmatprep.subr.mxu0 %v1482_v18 }
 0x529   :  { %683 = vmatpush1.msra.mxu0 %v1485_v20 }
 0x52a   :  { %684 = vmatprep.subr.mxu0 %v1488_v22 }
 0x52b   :  { %685 = vmatpush1.msra.mxu0 %v1491_v24 }
 0x52c   :  { %686 = vmatprep.subr.mxu0 %v1494_v26 }
 0x52d   :  { %687 = vmatpush1.msra.mxu0 %v1497_v28 }
 0x52e   :  { %688 = vmatprep.subr.mxu0 %v1500_v30 }
 0x52f   :  { %689 = vmatpush1.msra.mxu0 %v1503_v32 }
 0x530   :  { %690 = vmatprep.subr.mxu0 %v1506_v34 }
 0x531   :  { %691 = vmatpush1.msra.mxu0 %v1509_v36 }
 0x532   :  { %692 = vmatprep.subr.mxu0 %v1512_v38 }
 0x533   :  { %693 = vmatpush1.msra.mxu0 %v1515_v40 }
 0x534   :  { %896 = vmatprep.subr.mxu0 %v1472_v11 }
 0x56f   :  { %v1633_v48 = vpop.f32.mrf.mxu0 }
 0x571   :  { %v1635_v5 = vpop.f32.mrf.mxu0 }
 0x5e4   :  { %v516_v7 = vpop.f32.mrf.mxu0 }
 0x5e5   :  { %v517_v8 = vadd.f32 %v516_v7, %v443_v6 }
 0x5e6   :  { %v518_v10 = vpop.f32.mrf.mxu0 }
 0x5e7   :  { %v519_v12 = vadd.f32 %v518_v10, %v444_v9  ;;  %v1196_v17 = vmul.f32 -1.442695, %v517_v8  ;;  %v1685_v9 = vadd.f32 %v1635_v5, %v1566_v54 }
 0x5e9   :  { %1277 = vtanh.f32 %v519_v12  ;;  %v1197_v37 = vmul.f32 -1.442695, %v519_v12 }
 0x5ea   :  { %1279 = vpow2.f32 %v1196_v17  ;;  %v1691_v17 = vadd.f32 %v1633_v48, %v1573_v63 }
 0x5f6   :  { %v1278_v15 = vpop.eup %1277 }
 0x5f7   :  { %536 = vrot.lane.b32.xlu0 %v1278_v15, %s1415_s17  ;;  %v1280_v19 = vpop.eup %1279 }
 0x5f8   :  { %v527_v21 = vadd.f32 1.0, %v1280_v19 }
 0x5fa   :  { %1281 = vrcp.f32 %v527_v21 }
 0x607   :  { %v1282_v23 = vpop.eup %1281 }
 0x608   :  { %v534_v29 = vmul.f32 %v1282_v23, %v436_v53 }
 0x669   :  { %v537_v25 = vpop.permute.xlu0 %536 }
 0x66a   :  { %v539_v27 = vmul.f32 %v1282_v23, %v537_v25 }
 0x66c   :  { %541 = vrot.lane.b32.xlu1 %v539_v27, %s1415_s17 }
 0x6de   :  { %v542_v31 = vpop.permute.xlu1 %541 }
 0x6df   :  { %v544_v33 = vadd.f32 %v542_v31, %v534_v29 }
 0x6e1   :  { %1283 = vtanh.f32 %v544_v33 }
 0x6e2   :  { %1285 = vpow2.f32 %v1197_v37 }
 0x6ee   :  { %v1284_v35 = vpop.eup %1283 }
 0x6ef   :  { %547 = vrot.lane.b32.xlu0 %v1284_v35, %s1415_s17  ;;  %v1286_v39 = vpop.eup %1285 }
 0x6f0   :  { %v528_v41 = vadd.f32 1.0, %v1286_v39 }
 0x6f2   :  { %1287 = vrcp.f32 %v528_v41 }
 0x6ff   :  { %v1288_v42 = vpop.eup %1287 }
 0x761   :  { %v548_v43 = vpop.permute.xlu0 %547 }
 0x762   :  { %v550_v44 = vmul.f32 %v1288_v42, %v548_v43 }
 0x764   :  { %1198 = vmatmul.mubr.msk.f32.vlgmr.msra.gmra.mxu1 %vm228_vm5, %v550_v44 }
 0x765   :  { %789 = vmatpush1.msra.mxu1 %v1474_v13  ;;  %836 = vmatprep.mubr.f32.mxu1 %v1414_v1 }
 0x766   :  { %790 = vmatprep.subr.mxu1 %v1476_v14 }
 0x767   :  { %791 = vmatpush1.msra.mxu1 %v1479_v16 }
 0x768   :  { %792 = vmatprep.subr.mxu1 %v1482_v18 }
 0x769   :  { %793 = vmatpush1.msra.mxu1 %v1485_v20 }
 0x76a   :  { %794 = vmatprep.subr.mxu1 %v1488_v22 }
 0x76b   :  { %795 = vmatpush1.msra.mxu1 %v1491_v24 }
 0x76c   :  { %796 = vmatprep.subr.mxu1 %v1494_v26 }
 0x76d   :  { %797 = vmatpush1.msra.mxu1 %v1497_v28 }
 0x76e   :  { %798 = vmatprep.subr.mxu1 %v1500_v30 }
 0x76f   :  { %799 = vmatpush1.msra.mxu1 %v1503_v32 }
 0x770   :  { %800 = vmatprep.subr.mxu1 %v1506_v34 }
 0x771   :  { %801 = vmatpush1.msra.mxu1 %v1509_v36 }
 0x772   :  { %802 = vmatprep.subr.mxu1 %v1512_v38 }
 0x773   :  { %803 = vmatpush1.msra.mxu1 %v1515_v40 }
 0x774   :  { %1004 = vmatprep.subr.mxu1 %v1472_v11 }
 0x824   :  { %v624_v46 = vpop.f32.mrf.mxu1 }
 0x825   :  { %v625_v47 = vadd.f32 %v624_v46, %v551_v45 }
 0x826   :  { %v626_v50 = vpop.f32.mrf.mxu1 }
 0x827   :  { %v627_v51 = vadd.f32 %v626_v50, %v552_v49  ;;  %v1199_v53 = vmul.f32 -1.442695, %v625_v47 }
 0x829   :  { %1289 = vtanh.f32 %v627_v51  ;;  %v1200_v62 = vmul.f32 -1.442695, %v627_v51 }
 0x82a   :  { %1291 = vpow2.f32 %v1199_v53  ;;  %v874_v53 = vrot.slane %v1685_v9, 4 }
 0x836   :  { %v1290_v52 = vpop.eup %1289 }
 0x837   :  { %644 = vrot.lane.b32.xlu1 %v1290_v52, %s1415_s17  ;;  %v1292_v55 = vpop.eup %1291 }
 0x838   :  { %v635_v56 = vadd.f32 1.0, %v1292_v55 }
 0x83a   :  { %1293 = vrcp.f32 %v635_v56 }
 0x847   :  { %v1294_v57 = vpop.eup %1293 }
 0x848   :  { %v642_v0 = vmul.f32 %v1294_v57, %v544_v33 }
 0x8a9   :  { %v645_v59 = vpop.permute.xlu1 %644 }
 0x8aa   :  { %v647_v11 = vmul.f32 %v1294_v57, %v645_v59  ;;  %v873_v59 = vrot.slane %v1691_v17, 4 }
 0x8ac   :  { %649 = vrot.lane.b32.xlu0 %v647_v11, %s1415_s17 }
 0x91e   :  { %v650_v60 = vpop.permute.xlu0 %649 }
 0x91f   :  { %v652_v61 = vadd.f32 %v650_v60, %v642_v0 }
 0x921   :  { %1295 = vtanh.f32 %v652_v61 }
 0x922   :  { %1297 = vpow2.f32 %v1200_v62 }
 0x92e   :  { %v1296_v58 = vpop.eup %1295 }
 0x92f   :  { %655 = vrot.lane.b32.xlu1 %v1296_v58, %s1415_s17  ;;  %v1298_v2 = vpop.eup %1297 }
 0x930   :  { %v636_v3 = vadd.f32 1.0, %v1298_v2 }
 0x932   :  { %1299 = vrcp.f32 %v636_v3 }
 0x93f   :  { %v1300_v4 = vpop.eup %1299 }
 0x9a1   :  { %v656_v6 = vpop.permute.xlu1 %655 }
 0x9a2   :  { %v658_v7 = vmul.f32 %v1300_v4, %v656_v6 }
 0x9a4   :  { %1201 = vmatmul.mubr.msk.f32.vlgmr.msra.gmra.mxu0 %vm228_vm5, %v658_v7 }
 0x9a5   :  { %897 = vmatpush1.msra.mxu0 %v1474_v13  ;;  %944 = vmatprep.mubr.f32.mxu0 %v1414_v1 }
 0x9a6   :  { %898 = vmatprep.subr.mxu0 %v1476_v14 }
 0x9a7   :  { %899 = vmatpush1.msra.mxu0 %v1479_v16 }
 0x9a8   :  { %900 = vmatprep.subr.mxu0 %v1482_v18 }
 0x9a9   :  { %901 = vmatpush1.msra.mxu0 %v1485_v20 }
 0x9aa   :  { %902 = vmatprep.subr.mxu0 %v1488_v22 }
 0x9ab   :  { %903 = vmatpush1.msra.mxu0 %v1491_v24 }
 0x9ac   :  { %904 = vmatprep.subr.mxu0 %v1494_v26 }
 0x9ad   :  { %905 = vmatpush1.msra.mxu0 %v1497_v28 }
 0x9ae   :  { %906 = vmatprep.subr.mxu0 %v1500_v30 }
 0x9af   :  { %907 = vmatpush1.msra.mxu0 %v1503_v32 }
 0x9b0   :  { %908 = vmatprep.subr.mxu0 %v1506_v34 }
 0x9b1   :  { %909 = vmatpush1.msra.mxu0 %v1509_v36 }
 0x9b2   :  { %910 = vmatprep.subr.mxu0 %v1512_v38 }
 0x9b3   :  { %911 = vmatpush1.msra.mxu0 %v1515_v40 }
 0x9b4   :  { %1223 = vmatprep.subr.mxu0 %v1414_v1 }
 0xa64   :  { %v728_v8 = vpop.f32.mrf.mxu0 }
 0xa65   :  { %v729_v19 = vadd.f32 %v728_v8, %v1691_v17 }
 0xa66   :  { %v730_v10 = vpop.f32.mrf.mxu0 }
 0xa67   :  { %v731_v12 = vadd.f32 %v730_v10, %v1685_v9  ;;  %v1202_v21 = vmul.f32 -1.442695, %v729_v19 }
 0xa69   :  { %1301 = vtanh.f32 %v731_v12  ;;  %v1203_v63 = vmul.f32 -1.442695, %v731_v12 }
 0xa6a   :  { %1303 = vpow2.f32 %v1202_v21 }
 0xa76   :  { %v1302_v15 = vpop.eup %1301 }
 0xa77   :  { %748 = vrot.lane.b32.xlu0 %v1302_v15, %s1415_s17  ;;  %v1304_v23 = vpop.eup %1303 }
 0xa78   :  { %v739_v25 = vadd.f32 1.0, %v1304_v23 }
 0xa7a   :  { %1305 = vrcp.f32 %v739_v25  ;;  %v982_v25 = vrot.slane %v1685_v9, 6 }
 0xa87   :  { %v1306_v54 = vpop.eup %1305 }
 0xa88   :  { %v746_v29 = vmul.f32 %v1306_v54, %v652_v61 }
 0xae9   :  { %v749_v5 = vpop.permute.xlu0 %748 }
 0xaea   :  { %v751_v27 = vmul.f32 %v1306_v54, %v749_v5 }
 0xaec   :  { %753 = vrot.lane.b32.xlu1 %v751_v27, %s1415_s17 }
 0xb5e   :  { %v754_v31 = vpop.permute.xlu1 %753 }
 0xb5f   :  { %v756_v33 = vadd.f32 %v754_v31, %v746_v29  ;;  %v981_v29 = vrot.slane %v1691_v17, 6 }
 0xb61   :  { %1307 = vtanh.f32 %v756_v33 }
 0xb62   :  { %1309 = vpow2.f32 %v1203_v63 }
 0xb6e   :  { %v1308_v35 = vpop.eup %1307 }
 0xb6f   :  { %759 = vrot.lane.b32.xlu0 %v1308_v35, %s1415_s17  ;;  %v1310_v48 = vpop.eup %1309 }
 0xb70   :  { %v740_v37 = vadd.f32 1.0, %v1310_v48  ;;  %v1084_v48 = vld [vmem:[%s1774_s5 + $0x38] sm:$0xff] }
 0xb72   :  { %1311 = vrcp.f32 %v740_v37  ;;  %v1081_v37 = vld [vmem:[%s1774_s5 + $0x20] sm:$0xff] }
 0xb7f   :  { %v1312_v39 = vpop.eup %1311 }
 0xbe1   :  { %v760_v41 = vpop.permute.xlu0 %759 }
 0xbe2   :  { %v762_v42 = vmul.f32 %v1312_v39, %v760_v41  ;;  %v1080_v39 = vld [vmem:[%s1774_s5 + $0x18] sm:$0xff] }
 0xbe4   :  { %1204 = vmatmul.mubr.msk.f32.vlgmr.msra.gmra.mxu1 %vm228_vm5, %v762_v42 }
 0xbe5   :  { %1005 = vmatpush1.msra.mxu1 %v1474_v13  ;;  %1052 = vmatprep.mubr.f32.mxu1 %v1414_v1 }
 0xbe6   :  { %1006 = vmatprep.subr.mxu1 %v1476_v14  ;;  %v766_v14 = vrot.slane %v1685_v9, 2  ;;  %v1083_v9 = vld [vmem:[%s1774_s5 + $0x30] sm:$0xff] }
 0xbe7   :  { %1007 = vmatpush1.msra.mxu1 %v1479_v16 }
 0xbe8   :  { %1008 = vmatprep.subr.mxu1 %v1482_v18 }
 0xbe9   :  { %1009 = vmatpush1.msra.mxu1 %v1485_v20 }
 0xbea   :  { %1010 = vmatprep.subr.mxu1 %v1488_v22  ;;  %v765_v22 = vrot.slane %v1691_v17, 2  ;;  %v1082_v17 = vld [vmem:[%s1774_s5 + $0x28] sm:$0xff] }
 0xbeb   :  { %1011 = vmatpush1.msra.mxu1 %v1491_v24 }
 0xbec   :  { %1012 = vmatprep.subr.mxu1 %v1494_v26 }
 0xbed   :  { %1013 = vmatpush1.msra.mxu1 %v1497_v28 }
 0xbee   :  { %1014 = vmatprep.subr.mxu1 %v1500_v30 }
 0xbef   :  { %1015 = vmatpush1.msra.mxu1 %v1503_v32 }
 0xbf0   :  { %1016 = vmatprep.subr.mxu1 %v1506_v34 }
 0xbf1   :  { %1017 = vmatpush1.msra.mxu1 %v1509_v36 }
 0xbf2   :  { %1018 = vmatprep.subr.mxu1 %v1512_v38 }
 0xbf3   :  { %1019 = vmatpush1.msra.mxu1 %v1515_v40 }
 0xca4   :  { %v838_v13 = vpop.f32.mrf.mxu1 }
 0xca5   :  { %v839_v24 = vadd.f32 %v838_v13, %v765_v22  ;;  %v1079_v13 = vld [vmem:[%s1774_s5 + $0x10] sm:$0xff] }
 0xca6   :  { %v840_v16 = vpop.f32.mrf.mxu1 }
 0xca7   :  { %v841_v18 = vadd.f32 %v840_v16, %v766_v14  ;;  %v1205_v26 = vmul.f32 -1.442695, %v839_v24  ;;  %v1078_v16 = vld [vmem:[%s1774_s5 + $0x8] sm:$0xff] }
 0xca9   :  { %1313 = vtanh.f32 %v841_v18  ;;  %v1206_v45 = vmul.f32 -1.442695, %v841_v18  ;;  %v1077_v18 = vld [vmem:[%s1774_s5] sm:$0xff]  ;;  %s1383_s5 = scalar_lea.vmem %s1175_s4, 32 }
 0xcaa   :  { %1315 = vpow2.f32 %v1205_v26  ;;  %p1384_p10 = scmp.ne.s32.totalorder %s1175_s4, %s1383_s5  ;;  %p1389_p12 = scmp.lt.s32.totalorder %s1383_s5, %s1383_s5 }
 0xcac   :  { %p1390_p13 = por %p1389_p12, %p1388_p11 }
 0xcae   :  { %p1391_p0 = pnand %p1390_p13, %p1384_p10 }
 0xcb6   :  { %v1314_v20 = vpop.eup %1313 }
 0xcb7   :  { %858 = vrot.lane.b32.xlu1 %v1314_v20, %s1415_s17  ;;  %v1316_v28 = vpop.eup %1315 }
 0xcb8   :  { %v849_v30 = vadd.f32 1.0, %v1316_v28  ;;  %v1212_v28 = vld [vmem:[%s1775_s6] ss:$0 sm:$0xff] }
 0xcba   :  { %1317 = vrcp.f32 %v849_v30 }
 0xcc7   :  { %v1318_v32 = vpop.eup %1317 }
 0xcc8   :  { %v856_v38 = vmul.f32 %v1318_v32, %v756_v33 }
 0xd29   :  { %v859_v34 = vpop.permute.xlu1 %858 }
 0xd2a   :  { %v861_v36 = vmul.f32 %v1318_v32, %v859_v34 }
 0xd2c   :  { %863 = vrot.lane.b32.xlu0 %v861_v36, %s1415_s17 }
 0xd9e   :  { %v864_v40 = vpop.permute.xlu0 %863 }
 0xd9f   :  { %v866_v43 = vadd.f32 %v864_v40, %v856_v38 }
 0xda1   :  { %1319 = vtanh.f32 %v866_v43 }
 0xda2   :  { %1321 = vpow2.f32 %v1206_v45 }
 0xdae   :  { %v1320_v44 = vpop.eup %1319 }
 0xdaf   :  { %869 = vrot.lane.b32.xlu1 %v1320_v44, %s1415_s17  ;;  %v1322_v46 = vpop.eup %1321 }
 0xdb0   :  { %v850_v47 = vadd.f32 1.0, %v1322_v46 }
 0xdb2   :  { %1323 = vrcp.f32 %v850_v47 }
 0xdbf   :  { %v1324_v49 = vpop.eup %1323 }
 0xe21   :  { %v870_v50 = vpop.permute.xlu1 %869 }
 0xe22   :  { %v872_v51 = vmul.f32 %v1324_v49, %v870_v50 }
 0xe24   :  { %1207 = vmatmul.mubr.msk.f32.vlgmr.msra.gmra.mxu0 %vm228_vm5, %v872_v51 }
 0xe25   :  { %1224 = vmatpush3.msra.mxu0 %v1084_v48  ;;  %1239 = vmatprep.mubr.msk.f32.mxu0 %vm1416_vm9, %v1414_v1 }
 0xe26   :  { %1225 = vmatprep.subr.mxu0 %v1414_v1 }
 0xe27   :  { %1226 = vmatpush3.msra.mxu0 %v1083_v9 }
 0xe28   :  { %1227 = vmatprep.subr.mxu0 %v1414_v1 }
 0xe29   :  { %1228 = vmatpush3.msra.mxu0 %v1082_v17 }
 0xe2a   :  { %1229 = vmatprep.subr.mxu0 %v1414_v1 }
 0xe2b   :  { %1230 = vmatpush3.msra.mxu0 %v1081_v37 }
 0xe2c   :  { %1231 = vmatprep.subr.mxu0 %v1414_v1 }
 0xe2d   :  { %1232 = vmatpush3.msra.mxu0 %v1080_v39 }
 0xe2e   :  { %1233 = vmatprep.subr.mxu0 %v1414_v1 }
 0xe2f   :  { %1234 = vmatpush3.msra.mxu0 %v1079_v13 }
 0xe30   :  { %1235 = vmatprep.subr.mxu0 %v1414_v1 }
 0xe31   :  { %1236 = vmatpush3.msra.mxu0 %v1078_v16 }
 0xe32   :  { %1237 = vmatprep.subr.mxu0 %v1414_v1 }
 0xe33   :  { %1238 = vmatpush3.msra.mxu0 %v1077_v18 }
 0xee4   :  { %v946_v52 = vpop.f32.mrf.mxu0 }
 0xee5   :  { %v947_v11 = vadd.f32 %v946_v52, %v873_v59 }
 0xee6   :  { %v948_v55 = vpop.f32.mrf.mxu0 }
 0xee7   :  { %v949_v56 = vadd.f32 %v948_v55, %v874_v53  ;;  %v1208_v0 = vmul.f32 -1.442695, %v947_v11 }
 0xee9   :  { %1325 = vtanh.f32 %v949_v56  ;;  %v1209_v8 = vmul.f32 -1.442695, %v949_v56 }
 0xeea   :  { %1327 = vpow2.f32 %v1208_v0 }
 0xef6   :  { %v1326_v57 = vpop.eup %1325 }
 0xef7   :  { %966 = vrot.lane.b32.xlu0 %v1326_v57, %s1415_s17  ;;  %v1328_v60 = vpop.eup %1327 }
 0xef8   :  { %v957_v61 = vadd.f32 1.0, %v1328_v60 }
 0xefa   :  { %1329 = vrcp.f32 %v957_v61 }
 0xf07   :  { %v1330_v58 = vpop.eup %1329 }
 0xf08   :  { %v964_v3 = vmul.f32 %v1330_v58, %v866_v43 }
 0xf69   :  { %v967_v62 = vpop.permute.xlu0 %966 }
 0xf6a   :  { %v969_v2 = vmul.f32 %v1330_v58, %v967_v62 }
 0xf6c   :  { %971 = vrot.lane.b32.xlu1 %v969_v2, %s1415_s17 }
 0xfde   :  { %v972_v4 = vpop.permute.xlu1 %971 }
 0xfdf   :  { %v974_v6 = vadd.f32 %v972_v4, %v964_v3 }
 0xfe1   :  { %1331 = vtanh.f32 %v974_v6 }
 0xfe2   :  { %1333 = vpow2.f32 %v1209_v8 }
 0xfee   :  { %v1332_v7 = vpop.eup %1331 }
 0xfef   :  { %977 = vrot.lane.b32.xlu0 %v1332_v7, %s1415_s17  ;;  %v1334_v10 = vpop.eup %1333 }
 0xff0   :  { %v958_v12 = vadd.f32 1.0, %v1334_v10 }
 0xff2   :  { %1335 = vrcp.f32 %v958_v12 }
 0xfff   :  { %v1336_v15 = vpop.eup %1335 }
0x1061   :  { %v978_v19 = vpop.permute.xlu0 %977 }
0x1062   :  { %v980_v21 = vmul.f32 %v1336_v15, %v978_v19 }
0x1064   :  { %1210 = vmatmul.mubr.msk.f32.vlgmr.msra.gmra.mxu1 %vm228_vm5, %v980_v21 }
0x1124   :  { %v1054_v23 = vpop.f32.mrf.mxu1 }
0x1125   :  { %v1055_v31 = vadd.f32 %v1054_v23, %v981_v29 }
0x1126   :  { %v1056_v54 = vpop.f32.mrf.mxu1 }
0x1127   :  { %v1057_v5 = vadd.f32 %v1056_v54, %v982_v25  ;;  %v1211_v33 = vmul.f32 -1.442695, %v1055_v31 }
0x1129   :  { %1337 = vtanh.f32 %v1057_v5 }
0x112a   :  { %1339 = vpow2.f32 %v1211_v33 }
0x1136   :  { %v1338_v27 = vpop.eup %1337 }
0x1137   :  { %1068 = vrot.lane.b32.xlu1 %v1338_v27, %s1415_s17  ;;  %v1340_v35 = vpop.eup %1339 }
0x1138   :  { %v1062_v63 = vadd.f32 1.0, %v1340_v35 }
0x113a   :  { %1341 = vrcp.f32 %v1062_v63 }
0x1147   :  { %v1342_v41 = vpop.eup %1341 }
0x1148   :  { %v1066_v20 = vmul.f32 %v1342_v41, %v974_v6 }
0x11a9   :  { %v1069_v42 = vpop.permute.xlu1 %1068 }
0x11aa   :  { %v1071_v14 = vmul.f32 %v1342_v41, %v1069_v42 }
0x11ac   :  { %1073 = vrot.lane.b32.xlu0 %v1071_v14, %s1415_s17 }
0x121e   :  { %v1074_v22 = vpop.permute.xlu0 %1073 }
0x121f   :  { %v1076_v24 = vadd.f32 %v1074_v22, %v1066_v20 }
0x1221   :  { %1093 = vrot.lane.b32.xlu1 %v1076_v24, %s1415_s17 }
0x1293   :  { %v1094_v26 = vpop.permute.xlu1 %1093 }
0x1294   :  { %1240 = vmatmul.mubr.msk.f32.vlgmr.msra.gmra.mxu0 %vm228_vm5, %v1094_v26 }
0x1354   :  { %v1163_v30 = vpop.f32.mrf.mxu0 }
0x1355   :  { %v1164_v32 = vadd.f32 %v1212_v28, %v1163_v30 }
0x1356   :  { %v1241_v34 = vpop.f32.mrf.mxu0 }
0x1357   :  { %1167 = vst [vmem:[#allocation7] sm:$0x3] %v1164_v32 }
0x1358   :  { %1394 = shalt.err (!%p1391_p0)
}
0x1359   :  { %1177 = dma.vmem_to_hbm [thread:$0]  %s1175_s4, 32, %s1776_s7, [#allocation4]  }
0x135a   :  { %1407 = dma.done.wait [#allocation4], 32  }
0x135b   :  { %1408 = vsyncadd [#allocation4], 4294967264 }
0x135c   :  { %1181 = vsyncpa [#allocation3], 1 }
0x135d   :  { %1182 = vsyncpa [#allocation6], 1 }
0x135e   :  { %1183 = vsyncpa [#allocation4], 1 }

</bundles_post_ra>
